<compile_context>
chip_gen: v7x
topology: tpu7x:2x2x1
jax: 0.10.0
libtpu: 0.0.40
codegen_flags: <defaults>
</compile_context>

<pallas_src>
import jax
import jax.numpy as jnp
from jax import lax
from jax.experimental import pallas as pl
from jax.experimental.pallas import tpu as pltpu


_LANE = 128
_SUBLANE = 8
_MAX_BLOCK_ROWS = 512        # output joints gathered per grid step (1 step if j_out <= 512)
_MIN_PALLAS_BYTES = 2 << 20  # below this XLA's fused gather beats pallas_call + transposes
# TODO(synk): re-tune _MIN_PALLAS_BYTES per generation (crossover moves up on v7x HBM).
_MIN_LANE_WIDTH = 256        # need >= 2 full 128-lane vregs per gathered row for Pallas path


def _round_up(x, m):
    return (x + m - 1) // m * m


def _tpu_vmem_capacity_bytes():
    """Per-core VMEM capacity; conservative default if the query is unavailable."""
    try:
        cap = getattr(pltpu.get_tpu_info(), "vmem_capacity_bytes", None)
        if cap:
            return int(cap)
    except Exception:
        pass
    return 64 << 20  # v7x per-TensorCore VMEM; safe lower bound for v5e/v6e too


def _resident_block_spec(block_shape, index_map):
    # Constant block index across the inner grid axis => single-buffered resident
    # block; the second pipeline buffer would only waste VMEM.
    try:
        return pl.BlockSpec(block_shape, index_map, pipeline_mode=pl.Buffered(1))
    except (TypeError, AttributeError):
        return pl.BlockSpec(block_shape, index_map)


def _gather_rows_kernel(maps_ref, x_ref, o_ref):
    # maps_ref: (num_row_chunks * block_rows,) int32 in SMEM (scalar prefetch).
    # x_ref:    (J, tile_c) source lane-tile, resident in VMEM across row chunks.
    # o_ref:    (block_rows, tile_c) output rows for this grid step.
    row_chunk = pl.program_id(1)
    block_rows = o_ref.shape[0]
    base = row_chunk * block_rows

    def body(i, carry):
        src = maps_ref[base + i]
        o_ref[pl.ds(i, 1), :] = x_ref[pl.ds(src, 1), :]
        return carry

    # TODO(synk): for very wide C a one-hot MXU gather (jnp.dot(onehot, x_ref)) cuts
    # the masked single-sublane vst count ~8x (biggest win on v5e); it needs HIGHEST
    # matmul precision for f32 bit-exactness, so the plain row-copy loop is kept.
    lax.fori_loop(0, block_rows, body, 0, unroll=8)


def _joint_mapper_pallas(rows, maps, j_out):
    """Gather `j_out` rows of `rows` (J, C) according to `maps` via Pallas."""
    J, C = rows.shape
    itemsize = jnp.dtype(rows.dtype).itemsize

    J_pad = _round_up(J, _SUBLANE)
    C_pad = _round_up(C, _LANE)

    # One row chunk (single grid step along rows) whenever j_out <= _MAX_BLOCK_ROWS.
    block_rows = min(_round_up(max(j_out, 1), _SUBLANE), _MAX_BLOCK_ROWS)
    num_row_chunks = pl.cdiv(j_out, block_rows)
    j_out_pad = num_row_chunks * block_rows
    maps_pad = jnp.zeros((j_out_pad,), jnp.int32).at[:j_out].set(maps)

    # Lane-axis (C) tiling: keep (1x source tile + 2x output buffers) inside a
    # generation-aware VMEM budget (half of physical per-core VMEM).
    vmem_cap = _tpu_vmem_capacity_bytes()
    budget = vmem_cap // 2
    denom = (J_pad + 2 * block_rows) * itemsize
    max_tile_c = (budget // denom) // _LANE * _LANE
    if max_tile_c >= C_pad:
        tile_c = C                    # whole lane extent resident, single C tile
        num_c_tiles = 1
    elif max_tile_c >= _LANE:
        tile_c = int(max_tile_c)      # multiple of 128 lanes
        num_c_tiles = pl.cdiv(C, tile_c)
    else:
        # Source too tall for even one 128-lane tile; let XLA's gather handle it.
        # TODO(synk): also tile the J (source-row) axis for extremely large J.
        return jnp.take(rows, maps, axis=0)

    tile_c_pad = _round_up(min(tile_c, C_pad), _LANE)
    src_block_bytes = J_pad * tile_c_pad * itemsize          # Buffered(1): one copy
    out_block_bytes = block_rows * tile_c_pad * itemsize     # default double-buffered
    vmem_limit = min(src_block_bytes + 2 * out_block_bytes + (8 << 20), vmem_cap)

    grid_spec = pltpu.PrefetchScalarGridSpec(
        num_scalar_prefetch=1,
        # C tiles OUTER (megacore-parallel, disjoint source tiles per core),
        # row chunks INNER (arbitrary) so the source tile stays resident.
        grid=(num_c_tiles, num_row_chunks),
        in_specs=[
            _resident_block_spec((J, tile_c), lambda c, r, maps: (0, c)),
        ],
        out_specs=pl.BlockSpec((block_rows, tile_c), lambda c, r, maps: (r, c)),
    )

    return pl.pallas_call(
        _gather_rows_kernel,
        # Unpadded output: Pallas clips the partial final row block on writeback,
        # avoiding the extra XLA slice pass the padded variant needed.
        out_shape=jax.ShapeDtypeStruct((j_out, C), rows.dtype),
        grid_spec=grid_spec,
        compiler_params=pltpu.CompilerParams(
            dimension_semantics=("parallel", "arbitrary"),
            vmem_limit_bytes=int(vmem_limit),
        ),
    )(maps_pad, rows)


def joint_mapper(joints, joint_maps=None, *, force_pallas=False):
    """Pallas equivalent of JointMapper.forward.

    joints:     (B, J, D) array.
    joint_maps: None or 1-D integer array of length J_out with values in [0, J).
    returns:    joints if joint_maps is None, else joints[:, joint_maps, :].
    """
    if joint_maps is None:
        return joints

    B, J, D = joints.shape
    joint_maps = jnp.asarray(joint_maps, dtype=jnp.int32)
    (j_out,) = joint_maps.shape
    # Guard against out-of-range indices turning into OOB VMEM reads.
    # (torch.index_select would raise; here they are clamped into range.)
    joint_maps = jnp.clip(joint_maps, 0, J - 1)

    C = B * D
    itemsize = jnp.dtype(joints.dtype).itemsize
    total_bytes = joints.size * itemsize

    big_enough = total_bytes >= _MIN_PALLAS_BYTES and C >= _MIN_LANE_WIDTH
    if j_out == 0 or not (big_enough or force_pallas):
        # Tiny / lane-narrow inputs: XLA's fused gather beats pallas_call launch
        # plus the wrapper-side transposes.
        return jnp.take(joints, joint_maps, axis=1)

    # Row layout: gathered axis on sublanes, batch*coord on lanes (lane-dense rows).
    # TODO(synk): these two transposes are ~2 extra HBM passes on the standalone op;
    # accept/emit the (J, B*D) rows layout across the module boundary when the
    # surrounding model allows, so XLA can fuse them away.
    rows = jnp.transpose(joints, (1, 0, 2)).reshape(J, C)
    out_rows = _joint_mapper_pallas(rows, joint_maps, j_out)
    return jnp.transpose(out_rows.reshape(j_out, B, D), (1, 0, 2))


if __name__ == "__main__":
    key = jax.random.PRNGKey(0)
    k1, k2, k3 = jax.random.split(key, 3)

    # Case 1: small module-like shape, forced through the Pallas path.
    B, J, D = 2, 16, 3
    joints = jax.random.normal(k1, (B, J, D), dtype=jnp.float32)
    joint_maps = jnp.array([5, 0, 11, 3, 7, 15, 2, 9], dtype=jnp.int32)
    out = jax.block_until_ready(joint_mapper(joints, joint_maps, force_pallas=True))
    ref = jnp.take(joints, joint_maps, axis=1)
    assert out.shape == (B, joint_maps.shape[0], D), out.shape
    assert out.dtype == joints.dtype
    assert bool(jnp.array_equal(out, ref)), "Pallas gather mismatch vs reference"

    # Case 2: j_out not a multiple of 8 -> exercises the clipped final output block.
    B2, J2, D2 = 4, 24, 3
    joints2 = jax.random.normal(k2, (B2, J2, D2), dtype=jnp.float32)
    maps2 = jnp.array([3, 1, 22, 7, 7, 0, 19, 5, 11, 2, 16], dtype=jnp.int32)
    out2 = jax.block_until_ready(joint_mapper(joints2, maps2, force_pallas=True))
    assert bool(jnp.array_equal(out2, jnp.take(joints2, maps2, axis=1)))

    # Case 3: lane-dense rows (C = B*D >= 256) with duplicate / unordered indices.
    B3, J3, D3 = 96, 64, 3  # C = 288 lanes
    joints3 = jax.random.normal(k3, (B3, J3, D3), dtype=jnp.float32)
    maps3 = jnp.array(list(range(0, 63, 3)) + [7, 7, 0, 63, 12], dtype=jnp.int32)
    out3 = jax.block_until_ready(joint_mapper(joints3, maps3, force_pallas=True))
    assert bool(jnp.array_equal(out3, jnp.take(joints3, maps3, axis=1)))

    # Case 4: auto path (size/lane gates -> jnp.take) and None passthrough.
    out_auto = jax.block_until_ready(joint_mapper(joints, joint_maps))
    assert bool(jnp.array_equal(out_auto, ref))
    out_id = jax.block_until_ready(joint_mapper(joints, None))
    assert bool(jnp.array_equal(out_id, joints))

    print("KERNEL_OK")
</pallas_src>

<mosaic_0001>
module attributes {stable_mosaic.version = 11 : i64} {
  func.func @_gather_rows_kernel(%arg0: i32, %arg1: i32, %arg2: memref<8xi32, #tpu.memory_space<smem>>, %arg3: memref<16x6xf32, #tpu.memory_space<vmem>>, %arg4: memref<8x6xf32, #tpu.memory_space<vmem>>) attributes {dimension_semantics = [#tpu.dimension_semantics<parallel>, #tpu.dimension_semantics<arbitrary>], iteration_bounds = array<i64: 1, 1>, scalar_prefetch = 1 : i64, scratch_operands = 0 : i64, tpu.core_type = #tpu.core_type<tc>, window_params = [{pipeline_mode = #tpu.pipeline_mode<synchronous>, transform_indices = @transform_0, window_bounds = array<i64: 16, 6>}, {transform_indices = @transform_1, window_bounds = array<i64: 8, 6>}]} {
    %c8_i32 = arith.constant 8 : i32
    %0 = arith.muli %arg1, %c8_i32 : i32
    %c0_i32 = arith.constant 0 : i32
    %1 = arith.addi %0, %c0_i32 : i32
    %2 = arith.index_cast %1 : i32 to index
    %3 = memref.load %arg2[%2] : memref<8xi32, #tpu.memory_space<smem>>
    %4 = arith.index_cast %3 : i32 to index
    %c0 = arith.constant 0 : index
    %5 = vector.load %arg3[%4, %c0] : memref<16x6xf32, #tpu.memory_space<vmem>>, vector<1x6xf32>
    %6 = arith.index_cast %c0_i32 : i32 to index
    %c0_0 = arith.constant 0 : index
    %7 = vector.load %arg4[%6, %c0_0] : memref<8x6xf32, #tpu.memory_space<vmem>>, vector<1x6xf32>
    tpu.vector_store %arg4[%6, %c0_0], %5 {strides = array<i32>} : memref<8x6xf32, #tpu.memory_space<vmem>>, vector<1x6xf32>,
    %c1_i32 = arith.constant 1 : i32
    %8 = arith.addi %0, %c1_i32 : i32
    %9 = arith.index_cast %8 : i32 to index
    %10 = memref.load %arg2[%9] : memref<8xi32, #tpu.memory_space<smem>>
    %11 = arith.index_cast %10 : i32 to index
    %c0_1 = arith.constant 0 : index
    %12 = vector.load %arg3[%11, %c0_1] : memref<16x6xf32, #tpu.memory_space<vmem>>, vector<1x6xf32>
    %13 = arith.index_cast %c1_i32 : i32 to index
    %c0_2 = arith.constant 0 : index
    %14 = vector.load %arg4[%13, %c0_2] : memref<8x6xf32, #tpu.memory_space<vmem>>, vector<1x6xf32>
    tpu.vector_store %arg4[%13, %c0_2], %12 {strides = array<i32>} : memref<8x6xf32, #tpu.memory_space<vmem>>, vector<1x6xf32>,
    %c2_i32 = arith.constant 2 : i32
    %15 = arith.addi %0, %c2_i32 : i32
    %16 = arith.index_cast %15 : i32 to index
    %17 = memref.load %arg2[%16] : memref<8xi32, #tpu.memory_space<smem>>
    %18 = arith.index_cast %17 : i32 to index
    %c0_3 = arith.constant 0 : index
    %19 = vector.load %arg3[%18, %c0_3] : memref<16x6xf32, #tpu.memory_space<vmem>>, vector<1x6xf32>
    %20 = arith.index_cast %c2_i32 : i32 to index
    %c0_4 = arith.constant 0 : index
    %21 = vector.load %arg4[%20, %c0_4] : memref<8x6xf32, #tpu.memory_space<vmem>>, vector<1x6xf32>
    tpu.vector_store %arg4[%20, %c0_4], %19 {strides = array<i32>} : memref<8x6xf32, #tpu.memory_space<vmem>>, vector<1x6xf32>,
    %c3_i32 = arith.constant 3 : i32
    %22 = arith.addi %0, %c3_i32 : i32
    %23 = arith.index_cast %22 : i32 to index
    %24 = memref.load %arg2[%23] : memref<8xi32, #tpu.memory_space<smem>>
    %25 = arith.index_cast %24 : i32 to index
    %c0_5 = arith.constant 0 : index
    %26 = vector.load %arg3[%25, %c0_5] : memref<16x6xf32, #tpu.memory_space<vmem>>, vector<1x6xf32>
    %27 = arith.index_cast %c3_i32 : i32 to index
    %c0_6 = arith.constant 0 : index
    %28 = vector.load %arg4[%27, %c0_6] : memref<8x6xf32, #tpu.memory_space<vmem>>, vector<1x6xf32>
    tpu.vector_store %arg4[%27, %c0_6], %26 {strides = array<i32>} : memref<8x6xf32, #tpu.memory_space<vmem>>, vector<1x6xf32>,
    %c4_i32 = arith.constant 4 : i32
    %29 = arith.addi %0, %c4_i32 : i32
    %30 = arith.index_cast %29 : i32 to index
    %31 = memref.load %arg2[%30] : memref<8xi32, #tpu.memory_space<smem>>
    %32 = arith.index_cast %31 : i32 to index
    %c0_7 = arith.constant 0 : index
    %33 = vector.load %arg3[%32, %c0_7] : memref<16x6xf32, #tpu.memory_space<vmem>>, vector<1x6xf32>
    %34 = arith.index_cast %c4_i32 : i32 to index
    %c0_8 = arith.constant 0 : index
    %35 = vector.load %arg4[%34, %c0_8] : memref<8x6xf32, #tpu.memory_space<vmem>>, vector<1x6xf32>
    tpu.vector_store %arg4[%34, %c0_8], %33 {strides = array<i32>} : memref<8x6xf32, #tpu.memory_space<vmem>>, vector<1x6xf32>,
    %c5_i32 = arith.constant 5 : i32
    %36 = arith.addi %0, %c5_i32 : i32
    %37 = arith.index_cast %36 : i32 to index
    %38 = memref.load %arg2[%37] : memref<8xi32, #tpu.memory_space<smem>>
    %39 = arith.index_cast %38 : i32 to index
    %c0_9 = arith.constant 0 : index
    %40 = vector.load %arg3[%39, %c0_9] : memref<16x6xf32, #tpu.memory_space<vmem>>, vector<1x6xf32>
    %41 = arith.index_cast %c5_i32 : i32 to index
    %c0_10 = arith.constant 0 : index
    %42 = vector.load %arg4[%41, %c0_10] : memref<8x6xf32, #tpu.memory_space<vmem>>, vector<1x6xf32>
    tpu.vector_store %arg4[%41, %c0_10], %40 {strides = array<i32>} : memref<8x6xf32, #tpu.memory_space<vmem>>, vector<1x6xf32>,
    %c6_i32 = arith.constant 6 : i32
    %43 = arith.addi %0, %c6_i32 : i32
    %44 = arith.index_cast %43 : i32 to index
    %45 = memref.load %arg2[%44] : memref<8xi32, #tpu.memory_space<smem>>
    %46 = arith.index_cast %45 : i32 to index
    %c0_11 = arith.constant 0 : index
    %47 = vector.load %arg3[%46, %c0_11] : memref<16x6xf32, #tpu.memory_space<vmem>>, vector<1x6xf32>
    %48 = arith.index_cast %c6_i32 : i32 to index
    %c0_12 = arith.constant 0 : index
    %49 = vector.load %arg4[%48, %c0_12] : memref<8x6xf32, #tpu.memory_space<vmem>>, vector<1x6xf32>
    tpu.vector_store %arg4[%48, %c0_12], %47 {strides = array<i32>} : memref<8x6xf32, #tpu.memory_space<vmem>>, vector<1x6xf32>,
    %c7_i32 = arith.constant 7 : i32
    %50 = arith.addi %0, %c7_i32 : i32
    %51 = arith.index_cast %50 : i32 to index
    %52 = memref.load %arg2[%51] : memref<8xi32, #tpu.memory_space<smem>>
    %53 = arith.index_cast %52 : i32 to index
    %c0_13 = arith.constant 0 : index
    %54 = vector.load %arg3[%53, %c0_13] : memref<16x6xf32, #tpu.memory_space<vmem>>, vector<1x6xf32>
    %55 = arith.index_cast %c7_i32 : i32 to index
    %c0_14 = arith.constant 0 : index
    %56 = vector.load %arg4[%55, %c0_14] : memref<8x6xf32, #tpu.memory_space<vmem>>, vector<1x6xf32>
    tpu.vector_store %arg4[%55, %c0_14], %54 {strides = array<i32>} : memref<8x6xf32, #tpu.memory_space<vmem>>, vector<1x6xf32>,
    %c8_i32_15 = arith.constant 8 : i32
    return
  }
  func.func @transform_0(%arg0: i32, %arg1: i32, %arg2: memref<8xi32, #tpu.memory_space<smem>>) -> (i32, i32) {
    %c0_i32 = arith.constant 0 : i32
    %c0_i32_0 = arith.constant 0 : i32
    return %c0_i32, %arg0 : i32, i32
  }
  func.func @transform_1(%arg0: i32, %arg1: i32, %arg2: memref<8xi32, #tpu.memory_space<smem>>) -> (i32, i32) {
    %c0_i32 = arith.constant 0 : i32
    return %arg1, %arg0 : i32, i32
  }
}

</mosaic_0001>

<bundles_post_ra>
// kernel: tpu_custom_call.1
= control target key start
LH: loop header
LB: loop body
LE: loop exit
PB: predicated region body
PF: predicated region fallthrough
CT: control target
= control target key end

     0   :  { %s190_s0 = inlined_call_operand.vmem [shape: s32[8], index: 0, kind: input, shape index: {}]   ;;  %s191_s1 = inlined_call_operand.vmem [shape: f32[16,6], index: 1, kind: input, shape index: {}]   ;;  %s192_s2 = inlined_call_operand.hbm [shape: f32[8,6], index: 2, kind: output, shape index: {}]  }
   0x1   :  { %s7_s11 = sshll.u32 %s190_s0, 4  ;;  %s8_s11 = int_to_ptr.vmem [resolvable:$true] %s7_s11 }
   0x2   :  { %s88_s12 = scalar_lea.vmem %s8_s11, 16  ;;  %p93_p1 = scmp.lt.s32.totalorder %s8_s11, %s8_s11 }
   0x3   :  { %p89_p0 = scmp.ne.s32.totalorder %s8_s11, %s88_s12  ;;  %p94_p2 = scmp.lt.s32.totalorder %s88_s12, %s88_s12 }
   0x5   :  { %p95_p3 = por %p94_p2, %p93_p1 }
   0x7   :  { %p96_p4 = pnand %p95_p3, %p89_p0 }
   0x9   :  { %99 = shalt.err (!%p96_p4)  }
   0xa   :  { %s126_s13 = smov [#allocation3]  }
   0xb   :  { %10 = dma.vmem_to_smem %s8_s11, 16, %s126_s13, [#allocation2] }
   0xc   :  { %122 = dma.done.wait [#allocation2], 16 }
   0xd   :  { %123 = vsyncadd [#allocation2], 4294967280 }
   0xe   :  { %12 = sfence }
   0xf   :  { %s17_s14 = sld [smem:[#allocation3]]  ;;  %s79_s15 = sld [smem:[#allocation3 + $0x1]] }
  0x10   :  { %s80_s16 = sld [smem:[#allocation3 + $0x2]]  ;;  %s81_s17 = sld [smem:[#allocation3 + $0x3]] }
  0x11   :  { %13 = vsyncpa [#allocation5], 0  ;;  %s82_s18 = sld [smem:[#allocation3 + $0x4]]  ;;  %s83_s0 = sld [smem:[#allocation3 + $0x5]]  ;;  %vm20_vm0 = vcmask 40960  }
  0x12   :  { %s84_s19 = sld [smem:[#allocation3 + $0x6]]  ;;  %s85_s20 = sld [smem:[#allocation3 + $0x7]] }
  0x13   :  { %s127_s21 = smov [#allocation4]  }
  0x14   :  { %s63_s22 = sshll.u32 %s127_s21, 4  ;;  %s64_s22 = int_to_ptr.vmem [resolvable:$true] %s63_s22 }
  0x15   :  { %s18_s25 = scalar_lea.vmem %s191_s1, %s17_s14  ;;  %s24_s28 = scalar_lea.vmem %s191_s1, %s79_s15 }
  0x16   :  { %v19_v0 = vld [vmem:[%s18_s25] sm:$0x1]  ;;  %s29_s3 = scalar_lea.vmem %s191_s1, %s80_s16  ;;  %s34_s6 = scalar_lea.vmem %s191_s1, %s81_s17 }
  0x17   :  { %v25_v1 = vld [vmem:[%s24_s28] sm:$0x1]  ;;  %21 = vst.msk [vmem:[#allocation4] sm:$0x1] %vm20_vm0, %v19_v0  ;;  %s39_s9 = scalar_lea.vmem %s191_s1, %s82_s18  ;;  %s44_s12 = scalar_lea.vmem %s191_s1, %s83_s0 }
  0x18   :  { %26 = vst.msk [vmem:[#allocation4 + $0x1] sm:$0x1] %vm20_vm0, %v25_v1  ;;  %v30_v2 = vld [vmem:[%s29_s3] sm:$0x1]  ;;  %s49_s15 = scalar_lea.vmem %s191_s1, %s84_s19  ;;  %s54_s21 = scalar_lea.vmem %s191_s1, %s85_s20 }
  0x19   :  { %v35_v3 = vld [vmem:[%s34_s6] sm:$0x1]  ;;  %31 = vst.msk [vmem:[#allocation4 + $0x2] sm:$0x1] %vm20_vm0, %v30_v2  ;;  %s100_s18 = scalar_lea.vmem %s64_s22, 128  ;;  %p105_p6 = scmp.lt.s32.totalorder %s64_s22, %s64_s22 }
  0x1a   :  { %36 = vst.msk [vmem:[#allocation4 + $0x3] sm:$0x1] %vm20_vm0, %v35_v3  ;;  %v40_v4 = vld [vmem:[%s39_s9] sm:$0x1]  ;;  %p101_p5 = scmp.ne.s32.totalorder %s64_s22, %s100_s18  ;;  %p106_p7 = scmp.lt.s32.totalorder %s100_s18, %s100_s18 }
  0x1b   :  { %v45_v5 = vld [vmem:[%s44_s12] sm:$0x1]  ;;  %41 = vst.msk [vmem:[#allocation4 + $0x4] sm:$0x1] %vm20_vm0, %v40_v4 }
  0x1c   :  { %46 = vst.msk [vmem:[#allocation4 + $0x5] sm:$0x1] %vm20_vm0, %v45_v5  ;;  %v50_v6 = vld [vmem:[%s49_s15] sm:$0x1]  ;;  %p107_p8 = por %p106_p7, %p105_p6 }
  0x1d   :  { %v55_v7 = vld [vmem:[%s54_s21] sm:$0x1]  ;;  %51 = vst.msk [vmem:[#allocation4 + $0x6] sm:$0x1] %vm20_vm0, %v50_v6 }
  0x1e   :  { %56 = vst.msk [vmem:[#allocation4 + $0x7] sm:$0x1] %vm20_vm0, %v55_v7  ;;  %p108_p9 = pnand %p107_p8, %p101_p5 }
  0x20   :  { %111 = shalt.err (!%p108_p9)
}
  0x21   :  { %s112_s19 = scalar_lea.hbm %s192_s2, 128 }
  0x22   :  { %p113_p10 = scmp.ne.s32.totalorder %s192_s2, %s112_s19  ;;  %p116_p11 = scmp.lt.u32.totalorder %s112_s19, %s192_s2 }
  0x24   :  { %p118_p12 = pnand %p116_p11, %p113_p10 }
  0x26   :  { %121 = shalt.err (!%p118_p12)
}
  0x27   :  { %66 = dma.vmem_to_hbm [thread:$0]  %s64_s22, 128, %s192_s2, [#allocation5]  }
  0x28   :  { %124 = dma.done.wait [#allocation5], 128  }
  0x29   :  { %125 = vsyncadd [#allocation5], 4294967168 }
  0x2a   :  { %70 = vsyncpa [#allocation5], 1 }

</bundles_post_ra>
